<compile_context>
chip_gen: v7x
topology: tpu7x:2x2x1
jax: 0.10.0
libtpu: 0.0.40
codegen_flags: <defaults>
</compile_context>

<pallas_src>
import functools

import jax
import jax.numpy as jnp
from jax.experimental import pallas as pl
from jax.experimental.pallas import tpu as pltpu

R = 5  # number of radars (fixed by the model)


def _default_compute_dtype():
    """bf16 MAC path on v6e/v7x (bf16 VPU); f32 elsewhere (v5e has no bf16 VPU)."""
    try:
        kind = jax.devices()[0].device_kind.lower()
    except Exception:
        return jnp.float32
    if ("v6" in kind) or ("v7" in kind) or ("7x" in kind):
        return jnp.bfloat16
    return jnp.float32


@functools.lru_cache(maxsize=None)
def _roll_plus1_gives_prev():
    """True iff pltpu.roll(x, 1, axis=-1)[..., d] == x[..., d-1] (jnp.roll convention)."""
    def k(x_ref, o_ref):
        o_ref[...] = pltpu.roll(x_ref[...], shift=1, axis=1)
    x = jnp.arange(8 * 128, dtype=jnp.float32).reshape(8, 128)
    y = pl.pallas_call(k, out_shape=jax.ShapeDtypeStruct((8, 128), jnp.float32))(x)
    return bool(jnp.all(y == jnp.roll(x, 1, axis=1)))


# ----------------------------- Kernel 1: per-radar CNN -----------------------------
def _cnn_kernel(xm_ref, xn_ref, cw_ref, cb_ref, out_ref, carry_ref, acc_ref,
                *, T, D, prev_shift, next_shift):
    """3x3 conv (VPU MACs + XLU lane rolls) + ReLU; accumulates GAP lane-sums over T."""
    k = pl.program_id(1)
    nk = pl.num_programs(1)
    tileT, Dp = xm_ref.shape[1], xm_ref.shape[2]
    C = cw_ref.shape[1]
    cdt = xm_ref.dtype
    row0 = k * tileT

    @pl.when(k == 0)
    def _():
        acc_ref[...] = jnp.zeros_like(acc_ref)
        carry_ref[...] = jnp.zeros_like(carry_ref)

    x = xm_ref[0]                                              # [tileT, Dp]
    top = carry_ref[...]                                       # global row row0-1 (0 at k==0)
    hrow = xn_ref[0, 0:1, :]                                   # global row row0+tileT
    bot = jnp.where(row0 + tileT < T, hrow, jnp.zeros_like(hrow))
    carry_ref[...] = x[tileT - 1:tileT, :]                     # top halo for the next tile

    def compute(rows_valid):
        xm = x
        valid = None
        if rows_valid is not None:                             # ragged final tile only
            valid = jax.lax.broadcasted_iota(jnp.int32, (tileT, Dp), 0) < rows_valid
            xm = jnp.where(valid, xm, jnp.zeros_like(xm))
        views = (
            jnp.concatenate([top, xm[:-1, :]], axis=0),        # input row t-1
            xm,                                                # input row t
            jnp.concatenate([xm[1:, :], bot], axis=0),         # input row t+1
        )
        sums = []
        for c in range(C):
            acc = None
            for kh in range(3):
                v = views[kh]
                wl = cw_ref[3 * kh + 0, c].astype(cdt)
                wc = cw_ref[3 * kh + 1, c].astype(cdt)
                wr = cw_ref[3 * kh + 2, c].astype(cdt)
                term = (wl * pltpu.roll(v, shift=prev_shift, axis=1)      # col d-1 (XLU)
                        + wc * v
                        + wr * pltpu.roll(v, shift=next_shift, axis=1))   # col d+1 (XLU)
                acc = term if acc is None else acc + term
            acc = jnp.maximum(acc + cb_ref[0, c].astype(cdt), 0)          # bias + ReLU
            if rows_valid is not None:
                acc = jnp.where(valid, acc, jnp.zeros_like(acc))          # drop padded rows
            sums.append(jnp.sum(acc.astype(jnp.float32), axis=0, keepdims=True))  # f32 [1,Dp]
        acc_ref[...] += jnp.concatenate(sums, axis=0)                     # [C, Dp] f32

    if T % tileT == 0:
        compute(None)                       # every tile is full: no masking code emitted
    else:
        @pl.when(k < nk - 1)
        def _():
            compute(None)

        @pl.when(k == nk - 1)
        def _():
            compute(T - (pl.cdiv(T, tileT) - 1) * tileT)

    @pl.when(k == nk - 1)
    def _():
        lane = jax.lax.broadcasted_iota(jnp.int32, (1, C, Dp), 2)
        out_ref[...] = jnp.where(lane < D, acc_ref[...][None], 0.0)       # zero the pad lanes


# ------------- Kernel 2: GAP finish + FC + GAT + pooling + classifier (batched) ------
def _gat_cls_kernel(csum_ref, fw_ref, fb_ref, wg_ref, bg_ref, asrc_ref, adst_ref,
                    ebig_ref, w1_ref, b1_ref, w2_ref, b2_ref, out_ref,
                    *, B, H, O, inv_td):
    BR = csum_ref.shape[0]
    # Finish the global-average-pool (pad lanes already zero) and run the per-map FC
    # batched over all B*R maps.
    pooled = jnp.sum(csum_ref[...], axis=2) * inv_td                              # [BR, C]
    feat = jnp.maximum(
        jnp.dot(pooled, fw_ref[...], preferred_element_type=jnp.float32) + fb_ref[...], 0.0)
    h2d = jnp.dot(feat, wg_ref[...], preferred_element_type=jnp.float32)          # [BR, H*O]
    a_dst = jnp.dot(h2d, adst_ref[...], preferred_element_type=jnp.float32)       # [BR, H]
    a_src_t = jnp.dot(h2d, asrc_ref[...], preferred_element_type=jnp.float32).T   # [H, BR]

    # Dense 2-head GAT over all B disjoint 5-node graphs at once: cross-batch edges are
    # pre-masked with -1e9 inside ebig, so one (BR, BR) softmax per head covers the batch.
    heads = []
    for h in range(H):
        sc = a_dst[:, h:h + 1] + a_src_t[h:h + 1, :] + ebig_ref[h]                # [BR, BR]
        sc = jnp.where(sc > 0, sc, 0.2 * sc)                                      # LeakyReLU(0.2)
        sc = sc - jnp.max(sc, axis=1, keepdims=True)
        ex = jnp.exp(sc)
        attn = ex * pl.reciprocal(jnp.sum(ex, axis=1, keepdims=True), approx=True)
        heads.append(jnp.dot(attn, h2d[:, h * O:(h + 1) * O],
                             preferred_element_type=jnp.float32))                 # [BR, O]
    gat = jnp.concatenate(heads, axis=1) + bg_ref[...]                            # [BR, H*O]

    # Per-graph max / mean node pooling via a group mask (no sublane-splitting reshape).
    grp = (jax.lax.broadcasted_iota(jnp.int32, (B, BR), 1) // R
           == jax.lax.broadcasted_iota(jnp.int32, (B, BR), 0))                    # [B, BR]
    gb = gat[None, :, :]                                                          # [1, BR, HO]
    mx = jnp.max(gb + jnp.where(grp[:, :, None], 0.0, -1e30), axis=1)             # [B, HO]
    mn = jnp.sum(jnp.where(grp[:, :, None], gb, 0.0), axis=1) * (1.0 / R)         # [B, HO]
    g = jnp.concatenate([mx, mn], axis=1)                                         # [B, 2*HO]

    hid = jnp.maximum(
        jnp.dot(g, w1_ref[...], preferred_element_type=jnp.float32) + b1_ref[...], 0.0)
    logits = jnp.dot(hid, w2_ref[...], preferred_element_type=jnp.float32) + b2_ref[...]
    out_ref[...] = jax.nn.sigmoid(logits)                                         # [B, NC]


# ----------------------------------- Wrapper ----------------------------------------
def radar_gnn_forward(x, p, *, tile_t=1024, compute_dtype=None):
    B, Rn, T, D = x.shape
    assert Rn == R and T >= 8
    if compute_dtype is None:
        compute_dtype = _default_compute_dtype()
    C = p["conv_w"].shape[1]
    F = p["fc_w"].shape[1]
    H, O = p["heads"], p["gat_out"]
    HO = H * O
    hid = p["w1"].shape[1]
    NC = p["w2"].shape[1]
    BR = B * R

    # Lane-pad Doppler to a multiple of 128 (>= D+1 so every roll wrap lands in a zero
    # lane) and cast to the compute dtype in one fused pre-pass; kernel 1 then streams
    # lane-dense (bf16 on v6e/v7x) tiles straight from HBM.
    Dp = pl.cdiv(D + 1, 128) * 128
    xf = jnp.pad(x.reshape(BR, T, D), ((0, 0), (0, 0), (0, Dp - D))).astype(compute_dtype)

    # tileT = round_up(ceil(T/KT), 8) for KT ~= ceil(T / tile_t): big tiles, tiny ragged
    # tail (T=3658 -> 4 tiles of 920 rows).  Per-step VMEM is ~0.5-2 MiB: far below the
    # scoped defaults on v5e/v6e/v7x, so no vmem_limit override is needed.
    tt = max(8, min(int(tile_t), pl.cdiv(T, 8) * 8))
    KT = pl.cdiv(T, tt)
    tileT = pl.cdiv(pl.cdiv(T, KT), 8) * 8
    KT = pl.cdiv(T, tileT)
    TB8 = tileT // 8
    NB8 = pl.cdiv(T, 8)

    if _roll_plus1_gives_prev():
        prev_shift, next_shift = 1, Dp - 1
    else:
        prev_shift, next_shift = Dp - 1, 1

    smem = pl.BlockSpec(memory_space=pltpu.MemorySpace.SMEM)
    csum = pl.pallas_call(
        functools.partial(_cnn_kernel, T=T, D=D,
                          prev_shift=prev_shift, next_shift=next_shift),
        out_shape=jax.ShapeDtypeStruct((BR, C, Dp), jnp.float32),
        grid=(BR, KT),
        in_specs=[
            pl.BlockSpec((1, tileT, Dp), lambda i, k: (i, k, 0)),          # main row tile
            # bottom halo: 8-row block whose first row is global row (k+1)*tileT
            pl.BlockSpec((1, 8, Dp),
                         lambda i, k: (i, jnp.minimum((k + 1) * TB8, NB8 - 1), 0)),
            smem,                                                          # conv weights (9, C)
            smem,                                                          # conv bias    (1, C)
        ],
        out_specs=pl.BlockSpec((1, C, Dp), lambda i, k: (i, 0, 0)),
        scratch_shapes=[
            pltpu.VMEM((1, Dp), compute_dtype),       # carried top-halo row
            pltpu.VMEM((C, Dp), jnp.float32),         # lane-dense GAP accumulator
        ],
        compiler_params=pltpu.CompilerParams(
            dimension_semantics=("parallel", "arbitrary")),
    )(xf, xf, p["conv_w"], p["conv_b"])
    # TODO(synk): for tiny B on v7x, also split the T axis "parallel" across the two
    # TensorCores (private accumulators) to fix megacore load balance.

    # Block-diagonal attention bias over the whole batch: e_term on the diagonal 5x5
    # blocks, -1e9 elsewhere so cross-batch attention vanishes in the softmax.
    ebig = jnp.full((H, BR, BR), -1e9, jnp.float32)
    for b in range(B):
        ebig = ebig.at[:, b * R:(b + 1) * R, b * R:(b + 1) * R].set(p["e_term"])

    probs = pl.pallas_call(
        functools.partial(_gat_cls_kernel, B=B, H=H, O=O, inv_td=1.0 / float(T * D)),
        out_shape=jax.ShapeDtypeStruct((B, NC), jnp.float32),
        grid=(1,),
        in_specs=[
            pl.BlockSpec((BR, C, Dp), lambda b: (0, 0, 0)),
            pl.BlockSpec((C, F), lambda b: (0, 0)),
            pl.BlockSpec((1, F), lambda b: (0, 0)),
            pl.BlockSpec((F, HO), lambda b: (0, 0)),
            pl.BlockSpec((1, HO), lambda b: (0, 0)),
            pl.BlockSpec((HO, H), lambda b: (0, 0)),
            pl.BlockSpec((HO, H), lambda b: (0, 0)),
            pl.BlockSpec((H, BR, BR), lambda b: (0, 0, 0)),
            pl.BlockSpec((2 * HO, hid), lambda b: (0, 0)),
            pl.BlockSpec((1, hid), lambda b: (0, 0)),
            pl.BlockSpec((hid, NC), lambda b: (0, 0)),
            pl.BlockSpec((1, NC), lambda b: (0, 0)),
        ],
        out_specs=pl.BlockSpec((B, NC), lambda b: (0, 0)),
        compiler_params=pltpu.CompilerParams(dimension_semantics=("arbitrary",)),
    )(csum, p["fc_w"], p["fc_b"], p["gat_w"], p["gat_b"],
      p["a_src_mat"], p["a_dst_mat"], ebig,
      p["w1"], p["b1"], p["w2"], p["b2"])
    return probs


# ------------------------ deterministic parameter initialization --------------------
def init_params(key, *, C=8, F=32, O=32, H=2, hid=32, NC=10):
    ks = jax.random.split(key, 13)
    HO = H * O
    p = {"heads": H, "gat_out": O}
    p["conv_w"] = 0.2 * jax.random.normal(ks[0], (9, C), jnp.float32)   # Conv2d(1,C,3) as [9,C]
    p["conv_b"] = 0.1 * jax.random.normal(ks[1], (1, C), jnp.float32)
    p["fc_w"] = 0.2 * jax.random.normal(ks[2], (C, F), jnp.float32)
    p["fc_b"] = 0.1 * jax.random.normal(ks[3], (1, F), jnp.float32)
    p["gat_w"] = 0.2 * jax.random.normal(ks[4], (F, HO), jnp.float32)
    p["gat_b"] = 0.1 * jax.random.normal(ks[5], (1, HO), jnp.float32)

    a_src = 0.2 * jax.random.normal(ks[6], (H, O), jnp.float32)
    a_dst = 0.2 * jax.random.normal(ks[7], (H, O), jnp.float32)
    a_edge = 0.2 * jax.random.normal(ks[8], (H, O), jnp.float32)
    we_w = 0.2 * jax.random.normal(ks[9], (HO,), jnp.float32)           # edge Linear(1, H*O)
    we_b = 0.1 * jax.random.normal(ks[10], (HO,), jnp.float32)

    # Block-diagonal matrices so h2d @ a_*_mat gives per-head attention dot products.
    asm = jnp.zeros((HO, H), jnp.float32)
    adm = jnp.zeros((HO, H), jnp.float32)
    for h in range(H):
        asm = asm.at[h * O:(h + 1) * O, h].set(a_src[h])
        adm = adm.at[h * O:(h + 1) * O, h].set(a_dst[h])
    p["a_src_mat"], p["a_dst_mat"] = asm, adm

    # Static radar graph: fully connected (with self-loops, dist=0) over the 5 coords.
    coords = jnp.array([[3.19, 0.0],
                        [3.19 * 1.414 / 2.0, -3.19 * 1.414 / 2.0],
                        [0.0, -3.19],
                        [-3.19 * 1.414 / 2.0, -3.19 * 1.414 / 2.0],
                        [-3.19, 0.0]], jnp.float32)
    diff = coords[:, None, :] - coords[None, :, :]
    dist = jnp.sqrt(jnp.sum(diff * diff, axis=-1))                      # [R, R]
    c1 = jnp.stack([jnp.sum(a_edge[h] * we_w[h * O:(h + 1) * O]) for h in range(H)])
    c0 = jnp.stack([jnp.sum(a_edge[h] * we_b[h * O:(h + 1) * O]) for h in range(H)])
    p["e_term"] = dist[None, :, :] * c1[:, None, None] + c0[:, None, None]  # [H, R, R]

    p["w1"] = 0.2 * jax.random.normal(ks[11], (2 * HO, hid), jnp.float32)
    p["b1"] = jnp.zeros((1, hid), jnp.float32)
    p["w2"] = 0.1 * jax.random.normal(ks[12], (hid, NC), jnp.float32)
    p["b2"] = jnp.zeros((1, NC), jnp.float32)
    return p


# ------------------------------- pure-JAX reference ----------------------------------
def reference_forward(x, p):
    B, Rn, T, D = x.shape
    C = p["conv_w"].shape[1]
    H, O = p["heads"], p["gat_out"]
    xf = x.reshape(B * Rn, T, D).astype(jnp.float32)
    xp = jnp.pad(xf, ((0, 0), (1, 1), (1, 1)))
    pooled = []
    for c in range(C):
        acc = jnp.zeros((B * Rn, T, D), jnp.float32) + p["conv_b"][0, c]
        t = 0
        for kh in range(3):
            for kw in range(3):
                acc = acc + p["conv_w"][t, c] * xp[:, kh:kh + T, kw:kw + D]
                t += 1
        pooled.append(jnp.mean(jnp.maximum(acc, 0.0), axis=(1, 2)))
    pooled = jnp.stack(pooled, axis=1)                                   # [B*R, C]
    feat = jnp.maximum(pooled @ p["fc_w"] + p["fc_b"], 0.0)              # [B*R, F]
    h2d = feat @ p["gat_w"]                                              # [B*R, H*O]
    a_dst = (h2d @ p["a_dst_mat"]).reshape(B, Rn, H)
    a_src = (h2d @ p["a_src_mat"]).reshape(B, Rn, H)
    h3 = h2d.reshape(B, Rn, H * O)
    heads = []
    for h in range(H):
        sc = a_dst[:, :, h][:, :, None] + a_src[:, :, h][:, None, :] + p["e_term"][h][None]
        sc = jnp.where(sc > 0, sc, 0.2 * sc)
        attn = jax.nn.softmax(sc, axis=2)
        heads.append(jnp.einsum("bij,bjo->bio", attn, h3[:, :, h * O:(h + 1) * O]))
    gat = jnp.concatenate(heads, axis=2) + p["gat_b"][0][None, None, :]
    g = jnp.concatenate([jnp.max(gat, axis=1), jnp.mean(gat, axis=1)], axis=1)
    hidden = jnp.maximum(g @ p["w1"] + p["b1"], 0.0)
    return jax.nn.sigmoid(hidden @ p["w2"] + p["b2"])


if __name__ == "__main__":
    key = jax.random.PRNGKey(0)
    kx, kp = jax.random.split(key)
    B, T, D = 2, 20, 16          # small shapes (real model: T=3658, D=126)
    x = jax.random.normal(kx, (B, R, T, D), jnp.float32)
    params = init_params(kp)
    ref = reference_forward(x, params)

    # tile_t=8 at the toy size so the T-tiling / carried-halo / ragged-tail path is hit.
    out = radar_gnn_forward(x, params, tile_t=8, compute_dtype=jnp.float32)
    out = jax.block_until_ready(out)
    assert out.shape == (B, 10)
    assert bool(jnp.all(jnp.isfinite(out)))
    assert bool(jnp.all((out >= 0.0) & (out <= 1.0)))
    err = float(jnp.max(jnp.abs(out - ref)))
    assert err < 2e-2, f"f32 path max err {err}"

    # Also validate the bf16 MAC path when the chip supports it (v6e / v7x).
    if _default_compute_dtype() == jnp.bfloat16:
        out_bf = jax.block_until_ready(
            radar_gnn_forward(x, params, tile_t=8, compute_dtype=jnp.bfloat16))
        assert bool(jnp.all(jnp.isfinite(out_bf)))
        err_bf = float(jnp.max(jnp.abs(out_bf - ref)))
        assert err_bf < 4e-2, f"bf16 path max err {err_bf}"

    print("KERNEL_OK")
</pallas_src>

<mosaic_0001>
module attributes {stable_mosaic.version = 11 : i64} {
  func.func @k(%arg0: memref<8x128xf32, #tpu.memory_space<vmem>>, %arg1: memref<8x128xf32, #tpu.memory_space<vmem>>) attributes {dimension_semantics = [], scalar_prefetch = 0 : i64, scratch_operands = 0 : i64, tpu.core_type = #tpu.core_type<tc>} {
    %c0 = arith.constant 0 : index
    %c0_0 = arith.constant 0 : index
    %0 = vector.load %arg0[%c0, %c0_0] : memref<8x128xf32, #tpu.memory_space<vmem>>, vector<8x128xf32>
    %c1_i32 = arith.constant 1 : i32
    %1 = tpu.dynamic_rotate %0 by %c1_i32 dim 1 : vector<8x128xf32>, i32 -> vector<8x128xf32>
    %c0_1 = arith.constant 0 : index
    %c0_2 = arith.constant 0 : index
    %2 = vector.load %arg1[%c0_1, %c0_2] : memref<8x128xf32, #tpu.memory_space<vmem>>, vector<8x128xf32>
    tpu.vector_store %arg1[%c0_1, %c0_2], %1 {strides = array<i32>} : memref<8x128xf32, #tpu.memory_space<vmem>>, vector<8x128xf32>,
    return
  }
}

</mosaic_0001>

<bundles_post_ra>
// kernel: tpu_custom_call.1
= control target key start
LH: loop header
LB: loop body
LE: loop exit
PB: predicated region body
PF: predicated region fallthrough
CT: control target
= control target key end

     0   :  { %6 = vsyncpa [#allocation3], 0  ;;  %s128_s0 = inlined_call_operand.hbm [shape: f32[8,128], index: 0, kind: input, shape index: {}]   ;;  %s129_s1 = inlined_call_operand.hbm [shape: f32[8,128], index: 1, kind: output, shape index: {}]  }
   0x1   :  { %7 = vsyncpa [#allocation4], 0  ;;  %s91_s6 = smov [#allocation2]   ;;  %s43_s10 = scalar_lea.hbm %s128_s0, 128 }
   0x2   :  { %s14_s7 = sshll.u32 %s91_s6, 4  ;;  %p44_p0 = scmp.ne.s32.totalorder %s128_s0, %s43_s10  ;;  %s15_s7 = int_to_ptr.vmem [resolvable:$true] %s14_s7 }
   0x3   :  { %p47_p1 = scmp.lt.u32.totalorder %s43_s10, %s128_s0 }
   0x5   :  { %p49_p2 = pnand %p47_p1, %p44_p0 }
   0x7   :  { %52 = shalt.err (!%p49_p2)
}
   0x8   :  { %s53_s15 = scalar_lea.vmem %s15_s7, 128  ;;  %p58_p4 = scmp.lt.s32.totalorder %s15_s7, %s15_s7 }
   0x9   :  { %p54_p3 = scmp.ne.s32.totalorder %s15_s7, %s53_s15  ;;  %p59_p5 = scmp.lt.s32.totalorder %s53_s15, %s53_s15 }
   0xb   :  { %p60_p6 = por %p59_p5, %p58_p4 }
   0xd   :  { %p61_p7 = pnand %p60_p6, %p54_p3 }
   0xf   :  { %64 = shalt.err (!%p61_p7)
}
  0x10   :  { %17 = dma.hbm_to_vmem [thread:$0]  %s128_s0, 128, %s15_s7, [#allocation3]  }
  0x11   :  { %87 = dma.done.wait [#allocation3], 128  }
  0x12   :  { %88 = vsyncadd [#allocation3], 4294967168  ;;  %v21_v0 = vld [vmem:[#allocation2] sm:$0xff]  ;;  %s92_s18 = smov 1   ;;  %s93_s19 = smov [#allocation5]  }
  0x13   :  { %22 = vrot.lane.b32.xlu0 %v21_v0, %s92_s18  ;;  %s31_s20 = sshll.u32 %s93_s19, 4  ;;  %s32_s20 = int_to_ptr.vmem [resolvable:$true] %s31_s20 }
  0x14   :  { %s65_s21 = scalar_lea.vmem %s32_s20, 128  ;;  %p70_p9 = scmp.lt.s32.totalorder %s32_s20, %s32_s20 }
  0x15   :  { %p66_p8 = scmp.ne.s32.totalorder %s32_s20, %s65_s21  ;;  %p71_p10 = scmp.lt.s32.totalorder %s65_s21, %s65_s21 }
  0x17   :  { %p72_p11 = por %p71_p10, %p70_p9 }
  0x19   :  { %p73_p12 = pnand %p72_p11, %p66_p8 }
  0x85   :  { %v23_v1 = vpop.permute.xlu0 %22 }
  0x86   :  { %24 = vst [vmem:[#allocation5] sm:$0xff] %v23_v1 }
  0x87   :  { %76 = shalt.err (!%p73_p12)
}
  0x88   :  { %s77_s0 = scalar_lea.hbm %s129_s1, 128 }
  0x89   :  { %p78_p13 = scmp.ne.s32.totalorder %s129_s1, %s77_s0  ;;  %p81_p0 = scmp.lt.u32.totalorder %s77_s0, %s129_s1 }
  0x8b   :  { %p83_p1 = pnand %p81_p0, %p78_p13 }
  0x8d   :  { %86 = shalt.err (!%p83_p1)
}
  0x8e   :  { %34 = dma.vmem_to_hbm [thread:$0]  %s32_s20, 128, %s129_s1, [#allocation4]  }
  0x8f   :  { %89 = dma.done.wait [#allocation4], 128  }
  0x90   :  { %90 = vsyncadd [#allocation4], 4294967168 }
  0x91   :  { %38 = vsyncpa [#allocation3], 1 }
  0x92   :  { %39 = vsyncpa [#allocation4], 1 }

</bundles_post_ra>
